<compile_context>
chip_gen: v5e
topology: v5e:2x2
jax: 0.10.0
libtpu: 0.0.40
codegen_flags: <defaults>
</compile_context>

<pallas_src>
from math import gcd

import jax
import jax.numpy as jnp
from jax.experimental import pallas as pl
from jax.experimental.pallas import tpu as pltpu

LANE = 128


def _layer_scale_kernel(y_ref, scale_ref, o_ref):
    # y_ref: (TR, L) block, scale_ref: (1, L) f32 block -> broadcast multiply
    # in f32 (matches PyTorch bf16*f32 promotion), cast only at the store.
    y = y_ref[...].astype(jnp.float32)
    o_ref[...] = (y * scale_ref[...]).astype(o_ref.dtype)


def _lcm(a, b):
    return a * b // gcd(a, b)


def lane_width(dim):
    """Lane-dense row width: smallest multiple of both `dim` and 128."""
    return _lcm(dim, LANE)


def _tpu_vmem_capacity_bytes():
    try:
        return int(pltpu.get_tpu_info().vmem_capacity_bytes)
    except Exception:
        return 64 * 1024 * 1024  # conservative fallback (v7x physical VMEM)


def _tile_budget_bytes(vmem_capacity):
    # in + out double-buffered ~= 4x tile; keep total well under capacity.
    # v7x (64 MiB)  -> 4 MiB tiles (~16 MiB live)
    # v5e/v6e (128 MiB) -> 8 MiB tiles (~32 MiB live)
    return min(16 << 20, max(2 << 20, vmem_capacity // 16))


def _choose_tile_rows(rows, row_bytes, tile_budget):
    """Row-tile size: big (VMEM-budget-sized) tiles, but always >=2 (usually
    >=4) grid steps when the tensor is big enough for pipelining to matter."""
    total_bytes = rows * row_bytes
    if total_bytes <= (2 << 20) or rows < 16:
        return rows  # tiny tensor: one full-extent block is fine
    tr = max(1, tile_budget // max(row_bytes, 1))
    if rows >= 32:
        tr = min(tr, rows // 4)   # >=4 steps: pipelining + v7x megacore
    else:
        tr = min(tr, rows // 2)   # >=2 steps
    tr = max(8, (tr // 8) * 8)    # sublane alignment
    return min(tr, rows)


def _layer_scale_2d(y2, scale_row):
    """y2: (rows, L), scale_row: (1, L) f32 -> y2 * scale_row, tiled over rows."""
    rows, L = y2.shape
    itemsize = y2.dtype.itemsize
    vmem_capacity = _tpu_vmem_capacity_bytes()
    tile_budget = _tile_budget_bytes(vmem_capacity)
    tr = _choose_tile_rows(rows, L * itemsize, tile_budget)
    grid = (pl.cdiv(rows, tr),)

    # Enough scoped VMEM for double-buffered in+out tiles (+ headroom); never
    # above physical capacity (v7x is only 64 MiB).
    vmem_limit = min(vmem_capacity,
                     max(32 << 20, 4 * tr * L * itemsize + (8 << 20)))

    nbytes = rows * L * itemsize
    cost = pl.CostEstimate(
        flops=rows * L,
        transcendentals=0,
        bytes_accessed=2 * nbytes + L * 4,
    )

    return pl.pallas_call(
        _layer_scale_kernel,
        out_shape=jax.ShapeDtypeStruct((rows, L), y2.dtype),
        grid_spec=pltpu.PrefetchScalarGridSpec(
            num_scalar_prefetch=0,
            grid=grid,
            in_specs=[
                pl.BlockSpec((tr, L), lambda i: (i, 0)),
                pl.BlockSpec((1, L), lambda i: (0, 0)),  # resident scale row
            ],
            out_specs=pl.BlockSpec((tr, L), lambda i: (i, 0)),
        ),
        compiler_params=pltpu.CompilerParams(
            dimension_semantics=("parallel",),
            vmem_limit_bytes=vmem_limit,
        ),
        input_output_aliases={0: 0},  # LayerScale is in-place-able
        cost_estimate=cost,
    )(y2, scale_row)


def precompute_scale_row(scale):
    """(1, 1, D) parameter -> (1, L) f32 lane-dense row.

    Hoist this out of the per-forward hot path and reuse it across calls.
    """
    D = scale.shape[-1]
    L = lane_width(D)
    return jnp.tile(scale.reshape(1, D).astype(jnp.float32), (1, L // D))


def layer_scale(y, scale, scale_row=None):
    """Applies y * scale where scale has shape (1, 1, dim)."""
    B, S, D = y.shape
    assert scale.shape == (1, 1, D)
    L = lane_width(D)
    if scale_row is None:
        scale_row = precompute_scale_row(scale)

    N = B * S * D
    rows = -(-N // L)
    pad = rows * L - N

    # Lane-dense re-rowing: L is a multiple of both D and 128, and every row
    # starts at a scale-period boundary (L % D == 0), so broadcasting the
    # tiled scale row is exact. Padding (if any) is multiplied then sliced off.
    flat = y.reshape(-1)
    if pad:
        flat = jnp.pad(flat, (0, pad))
    y2 = flat.reshape(rows, L)
    out2 = _layer_scale_2d(y2, scale_row)
    out_flat = out2.reshape(-1)
    if pad:
        out_flat = out_flat[:N]
    return out_flat.reshape(B, S, D)


def make_layer_scale_params(dim, depth, dtype=jnp.float32):
    """Deterministic init exactly as in the PyTorch __init__."""
    if depth <= 18:
        init_eps = 0.1
    elif depth <= 24:
        init_eps = 1e-05
    else:
        init_eps = 1e-06
    return jnp.full((1, 1, dim), init_eps, dtype=dtype)


def layer_scale_forward(x, scale, fn=lambda t: t, scale_row=None, **kwargs):
    # `fn` is an arbitrary injected sub-module in the PyTorch code; applied
    # here as plain-JAX glue (identity for the demo).
    y = fn(x, **kwargs)
    return layer_scale(y, scale, scale_row=scale_row)


if __name__ == "__main__":
    key = jax.random.PRNGKey(0)

    # Demo 1: small f32 case (D=32 -> lane-dense re-rowing to width 128).
    batch, seq, dim, depth = 2, 8, 32, 12
    x = jax.random.normal(key, (batch, seq, dim), dtype=jnp.float32)
    scale = make_layer_scale_params(dim, depth)
    scale_row = precompute_scale_row(scale)  # hoisted once, reused per forward
    out = jax.block_until_ready(layer_scale_forward(x, scale, scale_row=scale_row))
    ref = x * scale
    assert out.shape == (batch, seq, dim)
    assert jnp.allclose(out, ref, atol=1e-6, rtol=1e-6)

    # Demo 2: bf16 activations with f32 scale params (multiply in f32, store bf16).
    batch2, seq2, dim2, depth2 = 2, 64, 256, 26
    x2 = jax.random.normal(jax.random.PRNGKey(1), (batch2, seq2, dim2),
                           dtype=jnp.bfloat16)
    scale2 = make_layer_scale_params(dim2, depth2)
    out2 = jax.block_until_ready(layer_scale_forward(x2, scale2))
    ref2 = (x2.astype(jnp.float32) * scale2).astype(jnp.bfloat16)
    assert out2.shape == (batch2, seq2, dim2)
    assert jnp.allclose(out2.astype(jnp.float32), ref2.astype(jnp.float32),
                        atol=1e-6, rtol=1e-2)

    # Demo 3: pad path (N % L != 0): D=96 -> L=384, N=480 -> one pad + slice.
    batch3, seq3, dim3, depth3 = 1, 5, 96, 20
    x3 = jax.random.normal(jax.random.PRNGKey(2), (batch3, seq3, dim3),
                           dtype=jnp.float32)
    scale3 = make_layer_scale_params(dim3, depth3)
    out3 = jax.block_until_ready(layer_scale_forward(x3, scale3))
    ref3 = x3 * scale3
    assert out3.shape == (batch3, seq3, dim3)
    assert jnp.allclose(out3, ref3, atol=1e-6, rtol=1e-6)

    print("KERNEL_OK")
</pallas_src>

<mosaic_0001>
module attributes {stable_mosaic.version = 11 : i64} {
  func.func @_layer_scale_kernel(%arg0: i32, %arg1: memref<4x128xf32, #tpu.memory_space<vmem>>, %arg2: memref<1x128xf32, #tpu.memory_space<vmem>>, %arg3: memref<4x128xf32, #tpu.memory_space<vmem>>) attributes {dimension_semantics = [#tpu.dimension_semantics<parallel>], iteration_bounds = array<i64: 1>, scalar_prefetch = 0 : i64, scratch_operands = 0 : i64, tpu.core_type = #tpu.core_type<tc>, window_params = [{transform_indices = @transform_0, window_bounds = array<i64: 4, 128>}, {pipeline_mode = #tpu.pipeline_mode<synchronous>, transform_indices = @transform_1, window_bounds = array<i64: 1, 128>}, {transform_indices = @transform_2, window_bounds = array<i64: 4, 128>}]} {
    %c0 = arith.constant 0 : index
    %c0_0 = arith.constant 0 : index
    %0 = vector.load %arg1[%c0, %c0_0] : memref<4x128xf32, #tpu.memory_space<vmem>>, vector<4x128xf32>
    %c0_1 = arith.constant 0 : index
    %c0_2 = arith.constant 0 : index
    %1 = vector.load %arg2[%c0_1, %c0_2] : memref<1x128xf32, #tpu.memory_space<vmem>>, vector<1x128xf32>
    %2 = vector.broadcast %1 : vector<1x128xf32> to vector<4x128xf32>
    %3 = arith.mulf %0, %2 : vector<4x128xf32>
    %c0_3 = arith.constant 0 : index
    %c0_4 = arith.constant 0 : index
    %4 = vector.load %arg3[%c0_3, %c0_4] : memref<4x128xf32, #tpu.memory_space<vmem>>, vector<4x128xf32>
    tpu.vector_store %arg3[%c0_3, %c0_4], %3 {strides = array<i32>} : memref<4x128xf32, #tpu.memory_space<vmem>>, vector<4x128xf32>,
    return
  }
  func.func @transform_0(%arg0: i32) -> (i32, i32) {
    %c0_i32 = arith.constant 0 : i32
    %c0_i32_0 = arith.constant 0 : i32
    return %arg0, %c0_i32 : i32, i32
  }
  func.func @transform_1(%arg0: i32) -> (i32, i32) {
    %c0_i32 = arith.constant 0 : i32
    %c0_i32_0 = arith.constant 0 : i32
    %c0_i32_1 = arith.constant 0 : i32
    return %c0_i32, %c0_i32_0 : i32, i32
  }
  func.func @transform_2(%arg0: i32) -> (i32, i32) {
    %c0_i32 = arith.constant 0 : i32
    %c0_i32_0 = arith.constant 0 : i32
    return %arg0, %c0_i32 : i32, i32
  }
}

</mosaic_0001>

<bundles_post_ra>
// kernel: tpu_custom_call.1
= control target key start
LH: loop header
LB: loop body
LE: loop exit
PB: predicated region body
PF: predicated region fallthrough
CT: control target
= control target key end

     0   :  { %7 = vsyncpa [#allocation3], 0  ;;  %s131_s0 = inlined_call_operand.hbm [shape: f32[4,128], index: 0, kind: input, shape index: {}, may-alias: {0,2}]   ;;  %s132_s1 = inlined_call_operand.vmem [shape: f32[1,128], index: 1, kind: input, shape index: {}]   ;;  %s133_s2 = inlined_call_operand.hbm [shape: f32[4,128], index: 2, kind: output, shape index: {}, may-alias: {0,2}]  }
   0x1   :  { %8 = vsyncpa [#allocation4], 0  ;;  %s14_s11 = sshll.u32 %s131_s0, 4  ;;  %s105_s12 = smov [#allocation2]   ;;  %s15_s11 = int_to_ptr.hbm [resolvable:$true] %s14_s11 }
   0x2   :  { %s16_s13 = sshll.u32 %s105_s12, 4  ;;  %s17_s13 = int_to_ptr.vmem [resolvable:$true] %s16_s13 }
   0x3   :  { %19 = dma.hbm_to_vmem [thread:$0]  %s15_s11, 64, %s17_s13, [#allocation3]  }
   0x4   :  { %101 = dma.done.wait [#allocation3], 64  }
   0x5   :  { %102 = vsyncadd [#allocation3], 4294967232  ;;  %s106_s14 = smov [#allocation5]   ;;  %s40_s18 = sshll.u32 %s133_s2, 4  ;;  %v26_v0 = vld [vmem:[#allocation2] sm:$0xf]  ;;  %s41_s18 = int_to_ptr.hbm [resolvable:$true] %s40_s18 }
   0x6   :  { %s38_s15 = sshll.u32 %s106_s14, 4  ;;  %v52_v1 = vld [vmem:[%s132_s1] ss:$0 sm:$0xff]  ;;  %s39_s15 = int_to_ptr.vmem [resolvable:$true] %s38_s15 }
   0x7   :  { %v31_v2 = vmul.f32 %v52_v1, %v26_v0 }
   0x9   :  { %32 = vst [vmem:[#allocation5] sm:$0xf] %v31_v2 }
   0xa   :  { %43 = dma.vmem_to_hbm [thread:$0]  %s39_s15, 64, %s41_s18, [#allocation4]  }
   0xb   :  { %103 = dma.done.wait [#allocation4], 64  }
   0xc   :  { %104 = vsyncadd [#allocation4], 4294967232 }
   0xd   :  { %48 = vsyncpa [#allocation3], 1 }
   0xe   :  { %49 = vsyncpa [#allocation4], 1 }

</bundles_post_ra>
